<compile_context>
chip_gen: v5e
topology: v5e:2x2
jax: 0.10.0
libtpu: 0.0.40
codegen_flags: <defaults>
</compile_context>

<pallas_src>
import functools

import jax
import jax.numpy as jnp
from jax.experimental import pallas as pl
from jax.experimental.pallas import tpu as pltpu


def distance_task_kernel(x_ref, w1_ref, t1_ref, w2_ref, t2_ref,
                         w3_ref, b3_ref, o_ref,
                         mid_ref, col1_ref, col2_ref, *, H, W, pad):
    # x_ref  : (1, Cin, P + 2*pad)  flat-pixel input, zero-padded along pixels
    # w1_ref : (Cm, 9*Cin)          conv1 im2col weight, BN1 scale folded in
    # t1_ref : (Cm, 1)              folded BN1 shift
    # w2_ref : (Cm, 9*Cm)           conv2 im2col weight, BN2 scale folded in
    # t2_ref : (Cm, 1)              folded BN2 shift
    # w3_ref : (Cout, Cm)           1x1 conv weight (transposed)
    # b3_ref : (Cout, 1)            1x1 conv bias
    # o_ref  : (1, Cout, P)         lane-dense output block
    # mid_ref: (Cm, P + 2*pad)      VMEM scratch: padded y1 staging slab
    # col1_ref: (9*Cin, P)          VMEM scratch: conv1 im2col slab
    # col2_ref: (9*Cm, P)           VMEM scratch: conv2 im2col slab
    P = H * W
    Cin = x_ref.shape[1]
    Cm = w1_ref.shape[0]
    halo = W + 1

    # column-validity masks, built in-kernel (one iota + two compares per step)
    col = jax.lax.broadcasted_iota(jnp.int32, (1, P), 1) % W
    mask_l = (col >= 1).astype(jnp.float32)        # zero where col == 0     (dx == -1)
    mask_r = (col <= W - 2).astype(jnp.float32)    # zero where col == W - 1 (dx == +1)

    taps = [(dy, dx) for dy in (-1, 0, 1) for dx in (-1, 0, 1)]

    def stage_im2col(load, col_ref, cin):
        # shifts are plain static-offset loads from a zero-padded flat pixel
        # axis (pad >= W+1 absorbs the row halo); only the two column-wrap
        # masks remain, baked into the staged rows.
        for t, (dy, dx) in enumerate(taps):
            patch = load(pad + dy * W + dx)          # (cin, P)
            if dx == -1:
                patch = patch * mask_l
            elif dx == 1:
                patch = patch * mask_r
            col_ref[t * cin:(t + 1) * cin, :] = patch

    # ---- conv1 (3x3, pad=1, no bias) + BN1 (scale in weights) + ReLU ----
    stage_im2col(lambda s: x_ref[0, :, s:s + P], col1_ref, Cin)
    acc1 = jnp.dot(w1_ref[...], col1_ref[...],
                   preferred_element_type=jnp.float32)             # (Cm, P)
    y1 = jnp.maximum(acc1 + t1_ref[...], 0.0)

    # stage y1 into the padded flat slab; zero only the reachable halo window
    # (W+1 lanes per side), every grid step (megacore-safe), interior store is
    # 128-lane aligned and unmasked.
    mid_ref[:, pad - halo:pad] = jnp.zeros((Cm, halo), jnp.float32)
    mid_ref[:, pad + P:pad + P + halo] = jnp.zeros((Cm, halo), jnp.float32)
    mid_ref[:, pad:pad + P] = y1

    # ---- conv2 (3x3, pad=1, no bias) + BN2 (scale in weights) + ReLU ----
    stage_im2col(lambda s: mid_ref[:, s:s + P], col2_ref, Cm)
    acc2 = jnp.dot(w2_ref[...], col2_ref[...],
                   preferred_element_type=jnp.float32)             # (Cm, P)
    y2 = jnp.maximum(acc2 + t2_ref[...], 0.0)

    # ---- conv3 (1x1, with bias) ----
    out = jnp.dot(w3_ref[...], y2,
                  preferred_element_type=jnp.float32) + b3_ref[...]  # (Cout, P)
    o_ref[0] = out.astype(o_ref.dtype)


def distance_task_forward(x_nchw, params):
    """x_nchw: (N, Cin, H, W) float32 (PyTorch layout). Returns (N, Cout, H, W)."""
    N, Cin, H, W = x_nchw.shape
    w1, g1, b1, m1, v1, w2, g2, b2, m2, v2, w3, b3 = params
    Cm = w1.shape[3]
    Cout = w3.shape[1]
    eps = 1e-5

    P = H * W
    # pad >= W + 1 so row under/overflow of a tap lands in zeros; round to a
    # multiple of 128 so the interior scratch store / dy-shifted loads stay
    # lane-aligned.
    PAD = 128 * ((W + 1 + 127) // 128)
    Pp = P + 2 * PAD

    # fold BatchNorm (inference form): scale into the conv weights, keep shift
    inv1 = g1 / jnp.sqrt(v1 + eps)
    t1 = (b1 - m1 * inv1).reshape(Cm, 1)
    inv2 = g2 / jnp.sqrt(v2 + eps)
    t2 = (b2 - m2 * inv2).reshape(Cm, 1)

    # im2col-fused tap weights: (Cm, 9*Cin) / (Cm, 9*Cm), row index = tap*Cin + cin
    w1f = jnp.transpose(w1, (3, 0, 1, 2)).reshape(Cm, 9 * Cin) * inv1[:, None]
    w2f = jnp.transpose(w2, (3, 0, 1, 2)).reshape(Cm, 9 * Cm) * inv2[:, None]
    w3t = w3.T                              # (Cout, Cm)
    b3c = b3.reshape(Cout, 1)

    # channels-on-sublanes / pixels-on-lanes, zero-padded flat pixel axis
    xp = jnp.pad(x_nchw.reshape(N, Cin, P), ((0, 0), (0, 0), (PAD, PAD)))

    grid_spec = pltpu.PrefetchScalarGridSpec(
        num_scalar_prefetch=0,
        grid=(N,),
        in_specs=[
            pl.BlockSpec((1, Cin, Pp), lambda n: (n, 0, 0)),
            pl.BlockSpec((Cm, 9 * Cin), lambda n: (0, 0)),
            pl.BlockSpec((Cm, 1), lambda n: (0, 0)),
            pl.BlockSpec((Cm, 9 * Cm), lambda n: (0, 0)),
            pl.BlockSpec((Cm, 1), lambda n: (0, 0)),
            pl.BlockSpec((Cout, Cm), lambda n: (0, 0)),
            pl.BlockSpec((Cout, 1), lambda n: (0, 0)),
        ],
        out_specs=pl.BlockSpec((1, Cout, P), lambda n: (n, 0, 0)),
        scratch_shapes=[
            pltpu.VMEM((Cm, Pp), jnp.float32),       # padded y1 staging slab
            pltpu.VMEM((9 * Cin, P), jnp.float32),   # conv1 im2col slab
            pltpu.VMEM((9 * Cm, P), jnp.float32),    # conv2 im2col slab
        ],
    )

    out_flat = pl.pallas_call(
        functools.partial(distance_task_kernel, H=H, W=W, pad=PAD),
        out_shape=jax.ShapeDtypeStruct((N, Cout, P), jnp.float32),
        grid_spec=grid_spec,
        compiler_params=pltpu.CompilerParams(
            dimension_semantics=("parallel",)),
    )(xp, w1f, t1, w2f, t2, w3t, b3c)

    return out_flat.reshape(N, Cout, H, W)


def distance_task_reference(x_nchw, params):
    """Pure-JAX reference with the module's NCHW semantics."""
    w1, g1, b1, m1, v1, w2, g2, b2, m2, v2, w3, b3 = params
    eps = 1e-5

    def conv3x3(x, w):
        return jax.lax.conv_general_dilated(
            x, w, window_strides=(1, 1), padding="SAME",
            dimension_numbers=("NCHW", "HWIO", "NCHW"))

    def bn(x, g, b, m, v):
        inv = g / jnp.sqrt(v + eps)
        return x * inv.reshape(1, -1, 1, 1) + (b - m * inv).reshape(1, -1, 1, 1)

    y = jax.nn.relu(bn(conv3x3(x_nchw, w1), g1, b1, m1, v1))
    y = jax.nn.relu(bn(conv3x3(y, w2), g2, b2, m2, v2))
    y = jnp.einsum("nchw,co->nohw", y, w3) + b3.reshape(1, -1, 1, 1)
    return y


def init_params(key, in_channel, middle_channel, out_channel):
    ks = jax.random.split(key, 12)
    w1 = 0.1 * jax.random.normal(ks[0], (3, 3, in_channel, middle_channel), jnp.float32)
    g1 = 1.0 + 0.1 * jax.random.normal(ks[1], (middle_channel,), jnp.float32)
    b1 = 0.1 * jax.random.normal(ks[2], (middle_channel,), jnp.float32)
    m1 = 0.05 * jax.random.normal(ks[3], (middle_channel,), jnp.float32)
    v1 = 0.5 + jnp.abs(jax.random.normal(ks[4], (middle_channel,), jnp.float32)) * 0.5
    w2 = 0.1 * jax.random.normal(ks[5], (3, 3, middle_channel, middle_channel), jnp.float32)
    g2 = 1.0 + 0.1 * jax.random.normal(ks[6], (middle_channel,), jnp.float32)
    b2 = 0.1 * jax.random.normal(ks[7], (middle_channel,), jnp.float32)
    m2 = 0.05 * jax.random.normal(ks[8], (middle_channel,), jnp.float32)
    v2 = 0.5 + jnp.abs(jax.random.normal(ks[9], (middle_channel,), jnp.float32)) * 0.5
    w3 = 0.1 * jax.random.normal(ks[10], (middle_channel, out_channel), jnp.float32)
    b3 = 0.1 * jax.random.normal(ks[11], (out_channel,), jnp.float32)
    return (w1, g1, b1, m1, v1, w2, g2, b2, m2, v2, w3, b3)


if __name__ == "__main__":
    # small shapes consistent with the module: N=2, Cin=4, H=W=16, Cm=8, Cout=1
    N, Cin, H, W = 2, 4, 16, 16
    Cm, Cout = 8, 1

    key = jax.random.PRNGKey(0)
    kx, kp = jax.random.split(key)
    x_nchw = jax.random.normal(kx, (N, Cin, H, W), jnp.float32)   # PyTorch layout

    params = init_params(kp, Cin, Cm, Cout)

    out = distance_task_forward(x_nchw, params)
    out = jax.block_until_ready(out)

    ref = distance_task_reference(x_nchw, params)
    assert out.shape == (N, Cout, H, W), out.shape
    assert jnp.allclose(out, ref, rtol=1e-4, atol=1e-4), \
        float(jnp.max(jnp.abs(out - ref)))

    print("KERNEL_OK")
</pallas_src>

<mosaic_0001>
module attributes {stable_mosaic.version = 11 : i64} {
  func.func @distance_task_kernel(%arg0: i32, %arg1: memref<1x4x512xf32, #tpu.memory_space<vmem>>, %arg2: memref<8x36xf32, #tpu.memory_space<vmem>>, %arg3: memref<8x1xf32, #tpu.memory_space<vmem>>, %arg4: memref<8x72xf32, #tpu.memory_space<vmem>>, %arg5: memref<8x1xf32, #tpu.memory_space<vmem>>, %arg6: memref<1x8xf32, #tpu.memory_space<vmem>>, %arg7: memref<1x1xf32, #tpu.memory_space<vmem>>, %arg8: memref<1x1x256xf32, #tpu.memory_space<vmem>>, %arg9: memref<8x512xf32, #tpu.memory_space<vmem>>, %arg10: memref<36x256xf32, #tpu.memory_space<vmem>>, %arg11: memref<72x256xf32, #tpu.memory_space<vmem>>) attributes {dimension_semantics = [#tpu.dimension_semantics<parallel>], iteration_bounds = array<i64: 2>, scalar_prefetch = 0 : i64, scratch_operands = 3 : i64, tpu.core_type = #tpu.core_type<tc>, window_params = [{transform_indices = @transform_0, window_bounds = array<i64: 1, 4, 512>}, {pipeline_mode = #tpu.pipeline_mode<synchronous>, transform_indices = @transform_1, window_bounds = array<i64: 8, 36>}, {pipeline_mode = #tpu.pipeline_mode<synchronous>, transform_indices = @transform_2, window_bounds = array<i64: 8, 1>}, {pipeline_mode = #tpu.pipeline_mode<synchronous>, transform_indices = @transform_3, window_bounds = array<i64: 8, 72>}, {pipeline_mode = #tpu.pipeline_mode<synchronous>, transform_indices = @transform_4, window_bounds = array<i64: 8, 1>}, {pipeline_mode = #tpu.pipeline_mode<synchronous>, transform_indices = @transform_5, window_bounds = array<i64: 1, 8>}, {pipeline_mode = #tpu.pipeline_mode<synchronous>, transform_indices = @transform_6, window_bounds = array<i64: 1, 1>}, {transform_indices = @transform_7, window_bounds = array<i64: 1, 1, 256>}]} {
    %0 = tpu.iota {dimensions = array<i32: 1>} : vector<1x256xi32>
    %c16_i32 = arith.constant 16 : i32
    %c0_i32 = arith.constant 0 : i32
    %1 = arith.cmpi eq, %c16_i32, %c0_i32 : i32
    %c1_i32 = arith.constant 1 : i32
    %2 = arith.select %1, %c1_i32, %c16_i32 : i32
    %3 = vector.broadcast %2 : i32 to vector<1x256xi32>
    %4 = arith.remsi %0, %3 : vector<1x256xi32>
    %c0_i32_0 = arith.constant 0 : i32
    %5 = vector.broadcast %c0_i32_0 : i32 to vector<1x256xi32>
    %6 = arith.cmpi ne, %4, %5 : vector<1x256xi32>
    %c0_i32_1 = arith.constant 0 : i32
    %7 = vector.broadcast %c0_i32_1 : i32 to vector<1x256xi32>
    %8 = arith.cmpi slt, %4, %7 : vector<1x256xi32>
    %c0_i32_2 = arith.constant 0 : i32
    %9 = arith.cmpi slt, %2, %c0_i32_2 : i32
    %10 = vector.broadcast %9 : i1 to vector<1x256xi1>
    %11 = vector.broadcast %10 : vector<1x256xi1> to vector<1x256xi1>
    %12 = arith.xori %8, %11 : vector<1x256xi1>
    %13 = arith.andi %12, %6 : vector<1x256xi1>
    %14 = vector.broadcast %2 : i32 to vector<1x256xi32>
    %15 = arith.addi %4, %14 : vector<1x256xi32>
    %16 = arith.select %13, %15, %4 : vector<1x256xi1>, vector<1x256xi32>
    %c1_i32_3 = arith.constant 1 : i32
    %17 = vector.broadcast %c1_i32_3 : i32 to vector<1x256xi32>
    %18 = arith.cmpi sge, %16, %17 : vector<1x256xi32>
    %19 = arith.extui %18 : vector<1x256xi1> to vector<1x256xi32>
    %20 = arith.sitofp %19 : vector<1x256xi32> to vector<1x256xf32>
    %c14_i32 = arith.constant 14 : i32
    %21 = vector.broadcast %c14_i32 : i32 to vector<1x256xi32>
    %22 = arith.cmpi sle, %16, %21 : vector<1x256xi32>
    %23 = arith.extui %22 : vector<1x256xi1> to vector<1x256xi32>
    %24 = arith.sitofp %23 : vector<1x256xi32> to vector<1x256xf32>
    %c0 = arith.constant 0 : index
    %c0_4 = arith.constant 0 : index
    %c111 = arith.constant 111 : index
    %25 = vector.load %arg1[%c0, %c0_4, %c111] : memref<1x4x512xf32, #tpu.memory_space<vmem>>, vector<1x4x256xf32>
    %26 = vector.shape_cast %25 : vector<1x4x256xf32> to vector<4x256xf32>
    %27 = vector.broadcast %20 : vector<1x256xf32> to vector<4x256xf32>
    %28 = arith.mulf %26, %27 : vector<4x256xf32>
    %c0_5 = arith.constant 0 : index
    %c0_6 = arith.constant 0 : index
    %29 = vector.load %arg10[%c0_5, %c0_6] : memref<36x256xf32, #tpu.memory_space<vmem>>, vector<4x256xf32>
    tpu.vector_store %arg10[%c0_5, %c0_6], %28 {strides = array<i32>} : memref<36x256xf32, #tpu.memory_space<vmem>>, vector<4x256xf32>,
    %c0_7 = arith.constant 0 : index
    %c0_8 = arith.constant 0 : index
    %c112 = arith.constant 112 : index
    %30 = vector.load %arg1[%c0_7, %c0_8, %c112] : memref<1x4x512xf32, #tpu.memory_space<vmem>>, vector<1x4x256xf32>
    %31 = vector.shape_cast %30 : vector<1x4x256xf32> to vector<4x256xf32>
    %c4 = arith.constant 4 : index
    %c0_9 = arith.constant 0 : index
    %32 = vector.load %arg10[%c4, %c0_9] : memref<36x256xf32, #tpu.memory_space<vmem>>, vector<4x256xf32>
    tpu.vector_store %arg10[%c4, %c0_9], %31 {strides = array<i32>} : memref<36x256xf32, #tpu.memory_space<vmem>>, vector<4x256xf32>,
    %c0_10 = arith.constant 0 : index
    %c0_11 = arith.constant 0 : index
    %c113 = arith.constant 113 : index
    %33 = vector.load %arg1[%c0_10, %c0_11, %c113] : memref<1x4x512xf32, #tpu.memory_space<vmem>>, vector<1x4x256xf32>
    %34 = vector.shape_cast %33 : vector<1x4x256xf32> to vector<4x256xf32>
    %35 = vector.broadcast %24 : vector<1x256xf32> to vector<4x256xf32>
    %36 = arith.mulf %34, %35 : vector<4x256xf32>
    %c8 = arith.constant 8 : index
    %c0_12 = arith.constant 0 : index
    %37 = vector.load %arg10[%c8, %c0_12] : memref<36x256xf32, #tpu.memory_space<vmem>>, vector<4x256xf32>
    tpu.vector_store %arg10[%c8, %c0_12], %36 {strides = array<i32>} : memref<36x256xf32, #tpu.memory_space<vmem>>, vector<4x256xf32>,
    %c0_13 = arith.constant 0 : index
    %c0_14 = arith.constant 0 : index
    %c127 = arith.constant 127 : index
    %38 = vector.load %arg1[%c0_13, %c0_14, %c127] : memref<1x4x512xf32, #tpu.memory_space<vmem>>, vector<1x4x256xf32>
    %39 = vector.shape_cast %38 : vector<1x4x256xf32> to vector<4x256xf32>
    %40 = vector.broadcast %20 : vector<1x256xf32> to vector<4x256xf32>
    %41 = arith.mulf %39, %40 : vector<4x256xf32>
    %c12 = arith.constant 12 : index
    %c0_15 = arith.constant 0 : index
    %42 = vector.load %arg10[%c12, %c0_15] : memref<36x256xf32, #tpu.memory_space<vmem>>, vector<4x256xf32>
    tpu.vector_store %arg10[%c12, %c0_15], %41 {strides = array<i32>} : memref<36x256xf32, #tpu.memory_space<vmem>>, vector<4x256xf32>,
    %c0_16 = arith.constant 0 : index
    %c0_17 = arith.constant 0 : index
    %c128 = arith.constant 128 : index
    %43 = vector.load %arg1[%c0_16, %c0_17, %c128] : memref<1x4x512xf32, #tpu.memory_space<vmem>>, vector<1x4x256xf32>
    %44 = vector.shape_cast %43 : vector<1x4x256xf32> to vector<4x256xf32>
    %c16 = arith.constant 16 : index
    %c0_18 = arith.constant 0 : index
    %45 = vector.load %arg10[%c16, %c0_18] : memref<36x256xf32, #tpu.memory_space<vmem>>, vector<4x256xf32>
    tpu.vector_store %arg10[%c16, %c0_18], %44 {strides = array<i32>} : memref<36x256xf32, #tpu.memory_space<vmem>>, vector<4x256xf32>,
    %c0_19 = arith.constant 0 : index
    %c0_20 = arith.constant 0 : index
    %c129 = arith.constant 129 : index
    %46 = vector.load %arg1[%c0_19, %c0_20, %c129] : memref<1x4x512xf32, #tpu.memory_space<vmem>>, vector<1x4x256xf32>
    %47 = vector.shape_cast %46 : vector<1x4x256xf32> to vector<4x256xf32>
    %48 = vector.broadcast %24 : vector<1x256xf32> to vector<4x256xf32>
    %49 = arith.mulf %47, %48 : vector<4x256xf32>
    %c20 = arith.constant 20 : index
    %c0_21 = arith.constant 0 : index
    %50 = vector.load %arg10[%c20, %c0_21] : memref<36x256xf32, #tpu.memory_space<vmem>>, vector<4x256xf32>
    tpu.vector_store %arg10[%c20, %c0_21], %49 {strides = array<i32>} : memref<36x256xf32, #tpu.memory_space<vmem>>, vector<4x256xf32>,
    %c0_22 = arith.constant 0 : index
    %c0_23 = arith.constant 0 : index
    %c143 = arith.constant 143 : index
    %51 = vector.load %arg1[%c0_22, %c0_23, %c143] : memref<1x4x512xf32, #tpu.memory_space<vmem>>, vector<1x4x256xf32>
    %52 = vector.shape_cast %51 : vector<1x4x256xf32> to vector<4x256xf32>
    %53 = vector.broadcast %20 : vector<1x256xf32> to vector<4x256xf32>
    %54 = arith.mulf %52, %53 : vector<4x256xf32>
    %c24 = arith.constant 24 : index
    %c0_24 = arith.constant 0 : index
    %55 = vector.load %arg10[%c24, %c0_24] : memref<36x256xf32, #tpu.memory_space<vmem>>, vector<4x256xf32>
    tpu.vector_store %arg10[%c24, %c0_24], %54 {strides = array<i32>} : memref<36x256xf32, #tpu.memory_space<vmem>>, vector<4x256xf32>,
    %c0_25 = arith.constant 0 : index
    %c0_26 = arith.constant 0 : index
    %c144 = arith.constant 144 : index
    %56 = vector.load %arg1[%c0_25, %c0_26, %c144] : memref<1x4x512xf32, #tpu.memory_space<vmem>>, vector<1x4x256xf32>
    %57 = vector.shape_cast %56 : vector<1x4x256xf32> to vector<4x256xf32>
    %c28 = arith.constant 28 : index
    %c0_27 = arith.constant 0 : index
    %58 = vector.load %arg10[%c28, %c0_27] : memref<36x256xf32, #tpu.memory_space<vmem>>, vector<4x256xf32>
    tpu.vector_store %arg10[%c28, %c0_27], %57 {strides = array<i32>} : memref<36x256xf32, #tpu.memory_space<vmem>>, vector<4x256xf32>,
    %c0_28 = arith.constant 0 : index
    %c0_29 = arith.constant 0 : index
    %c145 = arith.constant 145 : index
    %59 = vector.load %arg1[%c0_28, %c0_29, %c145] : memref<1x4x512xf32, #tpu.memory_space<vmem>>, vector<1x4x256xf32>
    %60 = vector.shape_cast %59 : vector<1x4x256xf32> to vector<4x256xf32>
    %61 = vector.broadcast %24 : vector<1x256xf32> to vector<4x256xf32>
    %62 = arith.mulf %60, %61 : vector<4x256xf32>
    %c32 = arith.constant 32 : index
    %c0_30 = arith.constant 0 : index
    %63 = vector.load %arg10[%c32, %c0_30] : memref<36x256xf32, #tpu.memory_space<vmem>>, vector<4x256xf32>
    tpu.vector_store %arg10[%c32, %c0_30], %62 {strides = array<i32>} : memref<36x256xf32, #tpu.memory_space<vmem>>, vector<4x256xf32>,
    %c0_31 = arith.constant 0 : index
    %c0_32 = arith.constant 0 : index
    %64 = vector.load %arg2[%c0_31, %c0_32] : memref<8x36xf32, #tpu.memory_space<vmem>>, vector<8x36xf32>
    %c0_33 = arith.constant 0 : index
    %c0_34 = arith.constant 0 : index
    %65 = vector.load %arg10[%c0_33, %c0_34] : memref<36x256xf32, #tpu.memory_space<vmem>>, vector<36x256xf32>
    %cst = arith.constant dense<0.000000e+00> : vector<8x256xf32>
    %66 = tpu.matmul %64, %65, %cst {dimension_numbers = #tpu.dot_dimension_numbers<[1], [0], [0], [1], [0, 0, 1, 1], [], []>} : vector<8x36xf32>, vector<36x256xf32>, vector<8x256xf32> -> vector<8x256xf32>
    %c0_35 = arith.constant 0 : index
    %c0_36 = arith.constant 0 : index
    %67 = vector.load %arg3[%c0_35, %c0_36] : memref<8x1xf32, #tpu.memory_space<vmem>>, vector<8x1xf32>
    %68 = vector.broadcast %67 : vector<8x1xf32> to vector<8x256xf32>
    %69 = arith.addf %66, %68 : vector<8x256xf32>
    %cst_37 = arith.constant 0.000000e+00 : f32
    %70 = vector.broadcast %cst_37 : f32 to vector<8x256xf32>
    %71 = arith.maximumf %69, %70 : vector<8x256xf32>
    %cst_38 = arith.constant 0.000000e+00 : f32
    %72 = vector.broadcast %cst_38 : f32 to vector<8x17xf32>
    %c0_39 = arith.constant 0 : index
    %c111_40 = arith.constant 111 : index
    %73 = vector.load %arg9[%c0_39, %c111_40] : memref<8x512xf32, #tpu.memory_space<vmem>>, vector<8x17xf32>
    tpu.vector_store %arg9[%c0_39, %c111_40], %72 {strides = array<i32>} : memref<8x512xf32, #tpu.memory_space<vmem>>, vector<8x17xf32>,
    %cst_41 = arith.constant 0.000000e+00 : f32
    %74 = vector.broadcast %cst_41 : f32 to vector<8x17xf32>
    %c0_42 = arith.constant 0 : index
    %c384 = arith.constant 384 : index
    %75 = vector.load %arg9[%c0_42, %c384] : memref<8x512xf32, #tpu.memory_space<vmem>>, vector<8x17xf32>
    tpu.vector_store %arg9[%c0_42, %c384], %74 {strides = array<i32>} : memref<8x512xf32, #tpu.memory_space<vmem>>, vector<8x17xf32>,
    %c0_43 = arith.constant 0 : index
    %c128_44 = arith.constant 128 : index
    %76 = vector.load %arg9[%c0_43, %c128_44] : memref<8x512xf32, #tpu.memory_space<vmem>>, vector<8x256xf32>
    tpu.vector_store %arg9[%c0_43, %c128_44], %71 {strides = array<i32>} : memref<8x512xf32, #tpu.memory_space<vmem>>, vector<8x256xf32>,
    %c0_45 = arith.constant 0 : index
    %c111_46 = arith.constant 111 : index
    %77 = vector.load %arg9[%c0_45, %c111_46] : memref<8x512xf32, #tpu.memory_space<vmem>>, vector<8x256xf32>
    %78 = vector.broadcast %20 : vector<1x256xf32> to vector<8x256xf32>
    %79 = arith.mulf %77, %78 : vector<8x256xf32>
    %c0_47 = arith.constant 0 : index
    %c0_48 = arith.constant 0 : index
    %80 = vector.load %arg11[%c0_47, %c0_48] : memref<72x256xf32, #tpu.memory_space<vmem>>, vector<8x256xf32>
    tpu.vector_store %arg11[%c0_47, %c0_48], %79 {strides = array<i32>} : memref<72x256xf32, #tpu.memory_space<vmem>>, vector<8x256xf32>,
    %c0_49 = arith.constant 0 : index
    %c112_50 = arith.constant 112 : index
    %81 = vector.load %arg9[%c0_49, %c112_50] : memref<8x512xf32, #tpu.memory_space<vmem>>, vector<8x256xf32>
    %c8_51 = arith.constant 8 : index
    %c0_52 = arith.constant 0 : index
    %82 = vector.load %arg11[%c8_51, %c0_52] : memref<72x256xf32, #tpu.memory_space<vmem>>, vector<8x256xf32>
    tpu.vector_store %arg11[%c8_51, %c0_52], %81 {strides = array<i32>} : memref<72x256xf32, #tpu.memory_space<vmem>>, vector<8x256xf32>,
    %c0_53 = arith.constant 0 : index
    %c113_54 = arith.constant 113 : index
    %83 = vector.load %arg9[%c0_53, %c113_54] : memref<8x512xf32, #tpu.memory_space<vmem>>, vector<8x256xf32>
    %84 = vector.broadcast %24 : vector<1x256xf32> to vector<8x256xf32>
    %85 = arith.mulf %83, %84 : vector<8x256xf32>
    %c16_55 = arith.constant 16 : index
    %c0_56 = arith.constant 0 : index
    %86 = vector.load %arg11[%c16_55, %c0_56] : memref<72x256xf32, #tpu.memory_space<vmem>>, vector<8x256xf32>
    tpu.vector_store %arg11[%c16_55, %c0_56], %85 {strides = array<i32>} : memref<72x256xf32, #tpu.memory_space<vmem>>, vector<8x256xf32>,
    %c0_57 = arith.constant 0 : index
    %c127_58 = arith.constant 127 : index
    %87 = vector.load %arg9[%c0_57, %c127_58] : memref<8x512xf32, #tpu.memory_space<vmem>>, vector<8x256xf32>
    %88 = vector.broadcast %20 : vector<1x256xf32> to vector<8x256xf32>
    %89 = arith.mulf %87, %88 : vector<8x256xf32>
    %c24_59 = arith.constant 24 : index
    %c0_60 = arith.constant 0 : index
    %90 = vector.load %arg11[%c24_59, %c0_60] : memref<72x256xf32, #tpu.memory_space<vmem>>, vector<8x256xf32>
    tpu.vector_store %arg11[%c24_59, %c0_60], %89 {strides = array<i32>} : memref<72x256xf32, #tpu.memory_space<vmem>>, vector<8x256xf32>,
    %c0_61 = arith.constant 0 : index
    %c128_62 = arith.constant 128 : index
    %91 = vector.load %arg9[%c0_61, %c128_62] : memref<8x512xf32, #tpu.memory_space<vmem>>, vector<8x256xf32>
    %c32_63 = arith.constant 32 : index
    %c0_64 = arith.constant 0 : index
    %92 = vector.load %arg11[%c32_63, %c0_64] : memref<72x256xf32, #tpu.memory_space<vmem>>, vector<8x256xf32>
    tpu.vector_store %arg11[%c32_63, %c0_64], %91 {strides = array<i32>} : memref<72x256xf32, #tpu.memory_space<vmem>>, vector<8x256xf32>,
    %c0_65 = arith.constant 0 : index
    %c129_66 = arith.constant 129 : index
    %93 = vector.load %arg9[%c0_65, %c129_66] : memref<8x512xf32, #tpu.memory_space<vmem>>, vector<8x256xf32>
    %94 = vector.broadcast %24 : vector<1x256xf32> to vector<8x256xf32>
    %95 = arith.mulf %93, %94 : vector<8x256xf32>
    %c40 = arith.constant 40 : index
    %c0_67 = arith.constant 0 : index
    %96 = vector.load %arg11[%c40, %c0_67] : memref<72x256xf32, #tpu.memory_space<vmem>>, vector<8x256xf32>
    tpu.vector_store %arg11[%c40, %c0_67], %95 {strides = array<i32>} : memref<72x256xf32, #tpu.memory_space<vmem>>, vector<8x256xf32>,
    %c0_68 = arith.constant 0 : index
    %c143_69 = arith.constant 143 : index
    %97 = vector.load %arg9[%c0_68, %c143_69] : memref<8x512xf32, #tpu.memory_space<vmem>>, vector<8x256xf32>
    %98 = vector.broadcast %20 : vector<1x256xf32> to vector<8x256xf32>
    %99 = arith.mulf %97, %98 : vector<8x256xf32>
    %c48 = arith.constant 48 : index
    %c0_70 = arith.constant 0 : index
    %100 = vector.load %arg11[%c48, %c0_70] : memref<72x256xf32, #tpu.memory_space<vmem>>, vector<8x256xf32>
    tpu.vector_store %arg11[%c48, %c0_70], %99 {strides = array<i32>} : memref<72x256xf32, #tpu.memory_space<vmem>>, vector<8x256xf32>,
    %c0_71 = arith.constant 0 : index
    %c144_72 = arith.constant 144 : index
    %101 = vector.load %arg9[%c0_71, %c144_72] : memref<8x512xf32, #tpu.memory_space<vmem>>, vector<8x256xf32>
    %c56 = arith.constant 56 : index
    %c0_73 = arith.constant 0 : index
    %102 = vector.load %arg11[%c56, %c0_73] : memref<72x256xf32, #tpu.memory_space<vmem>>, vector<8x256xf32>
    tpu.vector_store %arg11[%c56, %c0_73], %101 {strides = array<i32>} : memref<72x256xf32, #tpu.memory_space<vmem>>, vector<8x256xf32>,
    %c0_74 = arith.constant 0 : index
    %c145_75 = arith.constant 145 : index
    %103 = vector.load %arg9[%c0_74, %c145_75] : memref<8x512xf32, #tpu.memory_space<vmem>>, vector<8x256xf32>
    %104 = vector.broadcast %24 : vector<1x256xf32> to vector<8x256xf32>
    %105 = arith.mulf %103, %104 : vector<8x256xf32>
    %c64 = arith.constant 64 : index
    %c0_76 = arith.constant 0 : index
    %106 = vector.load %arg11[%c64, %c0_76] : memref<72x256xf32, #tpu.memory_space<vmem>>, vector<8x256xf32>
    tpu.vector_store %arg11[%c64, %c0_76], %105 {strides = array<i32>} : memref<72x256xf32, #tpu.memory_space<vmem>>, vector<8x256xf32>,
    %c0_77 = arith.constant 0 : index
    %c0_78 = arith.constant 0 : index
    %107 = vector.load %arg4[%c0_77, %c0_78] : memref<8x72xf32, #tpu.memory_space<vmem>>, vector<8x72xf32>
    %c0_79 = arith.constant 0 : index
    %c0_80 = arith.constant 0 : index
    %108 = vector.load %arg11[%c0_79, %c0_80] : memref<72x256xf32, #tpu.memory_space<vmem>>, vector<72x256xf32>
    %cst_81 = arith.constant dense<0.000000e+00> : vector<8x256xf32>
    %109 = tpu.matmul %107, %108, %cst_81 {dimension_numbers = #tpu.dot_dimension_numbers<[1], [0], [0], [1], [0, 0, 1, 1], [], []>} : vector<8x72xf32>, vector<72x256xf32>, vector<8x256xf32> -> vector<8x256xf32>
    %c0_82 = arith.constant 0 : index
    %c0_83 = arith.constant 0 : index
    %110 = vector.load %arg5[%c0_82, %c0_83] : memref<8x1xf32, #tpu.memory_space<vmem>>, vector<8x1xf32>
    %111 = vector.broadcast %110 : vector<8x1xf32> to vector<8x256xf32>
    %112 = arith.addf %109, %111 : vector<8x256xf32>
    %cst_84 = arith.constant 0.000000e+00 : f32
    %113 = vector.broadcast %cst_84 : f32 to vector<8x256xf32>
    %114 = arith.maximumf %112, %113 : vector<8x256xf32>
    %c0_85 = arith.constant 0 : index
    %c0_86 = arith.constant 0 : index
    %115 = vector.load %arg6[%c0_85, %c0_86] : memref<1x8xf32, #tpu.memory_space<vmem>>, vector<1x8xf32>
    %cst_87 = arith.constant dense<0.000000e+00> : vector<1x256xf32>
    %116 = tpu.matmul %115, %114, %cst_87 {dimension_numbers = #tpu.dot_dimension_numbers<[1], [0], [0], [1], [0, 0, 1, 1], [], []>} : vector<1x8xf32>, vector<8x256xf32>, vector<1x256xf32> -> vector<1x256xf32>
    %c0_88 = arith.constant 0 : index
    %c0_89 = arith.constant 0 : index
    %117 = vector.load %arg7[%c0_88, %c0_89] : memref<1x1xf32, #tpu.memory_space<vmem>>, vector<1x1xf32>
    %118 = vector.broadcast %117 : vector<1x1xf32> to vector<1x256xf32>
    %119 = arith.addf %116, %118 : vector<1x256xf32>
    %c0_90 = arith.constant 0 : index
    %c0_91 = arith.constant 0 : index
    %c0_92 = arith.constant 0 : index
    %120 = vector.load %arg8[%c0_90, %c0_91, %c0_92] : memref<1x1x256xf32, #tpu.memory_space<vmem>>, vector<1x1x256xf32>
    %121 = vector.shape_cast %120 : vector<1x1x256xf32> to vector<1x256xf32>
    %122 = vector.shape_cast %119 : vector<1x256xf32> to vector<1x1x256xf32>
    tpu.vector_store %arg8[%c0_90, %c0_91, %c0_92], %122 {strides = array<i32>} : memref<1x1x256xf32, #tpu.memory_space<vmem>>, vector<1x1x256xf32>,
    return
  }
  func.func @transform_0(%arg0: i32) -> (i32, i32, i32) {
    %c0_i32 = arith.constant 0 : i32
    %c0_i32_0 = arith.constant 0 : i32
    %c0_i32_1 = arith.constant 0 : i32
    return %arg0, %c0_i32, %c0_i32_0 : i32, i32, i32
  }
  func.func @transform_1(%arg0: i32) -> (i32, i32) {
    %c0_i32 = arith.constant 0 : i32
    %c0_i32_0 = arith.constant 0 : i32
    %c0_i32_1 = arith.constant 0 : i32
    return %c0_i32, %c0_i32_0 : i32, i32
  }
  func.func @transform_2(%arg0: i32) -> (i32, i32) {
    %c0_i32 = arith.constant 0 : i32
    %c0_i32_0 = arith.constant 0 : i32
    %c0_i32_1 = arith.constant 0 : i32
    return %c0_i32, %c0_i32_0 : i32, i32
  }
  func.func @transform_3(%arg0: i32) -> (i32, i32) {
    %c0_i32 = arith.constant 0 : i32
    %c0_i32_0 = arith.constant 0 : i32
    %c0_i32_1 = arith.constant 0 : i32
    return %c0_i32, %c0_i32_0 : i32, i32
  }
  func.func @transform_4(%arg0: i32) -> (i32, i32) {
    %c0_i32 = arith.constant 0 : i32
    %c0_i32_0 = arith.constant 0 : i32
    %c0_i32_1 = arith.constant 0 : i32
    return %c0_i32, %c0_i32_0 : i32, i32
  }
  func.func @transform_5(%arg0: i32) -> (i32, i32) {
    %c0_i32 = arith.constant 0 : i32
    %c0_i32_0 = arith.constant 0 : i32
    %c0_i32_1 = arith.constant 0 : i32
    return %c0_i32, %c0_i32_0 : i32, i32
  }
  func.func @transform_6(%arg0: i32) -> (i32, i32) {
    %c0_i32 = arith.constant 0 : i32
    %c0_i32_0 = arith.constant 0 : i32
    %c0_i32_1 = arith.constant 0 : i32
    return %c0_i32, %c0_i32_0 : i32, i32
  }
  func.func @transform_7(%arg0: i32) -> (i32, i32, i32) {
    %c0_i32 = arith.constant 0 : i32
    %c0_i32_0 = arith.constant 0 : i32
    %c0_i32_1 = arith.constant 0 : i32
    return %arg0, %c0_i32, %c0_i32_0 : i32, i32, i32
  }
}

</mosaic_0001>

<bundles_post_ra>
// kernel: tpu_custom_call.1
= control target key start
LH: loop header
LB: loop body
LE: loop exit
PB: predicated region body
PF: predicated region fallthrough
CT: control target
= control target key end

     0   :  { %s1733_s0 = inlined_call_operand.hbm [shape: f32[2,4,512], index: 0, kind: input, shape index: {}]   ;;  %s1734_s1 = inlined_call_operand.vmem [shape: f32[8,36], index: 1, kind: input, shape index: {}]   ;;  %s1735_s2 = inlined_call_operand.vmem [shape: f32[8,1], index: 2, kind: input, shape index: {}]   ;;  %s1736_s3 = inlined_call_operand.vmem [shape: f32[8,72], index: 3, kind: input, shape index: {}]   ;;  %s1737_s4 = inlined_call_operand.vmem [shape: f32[8,1], index: 4, kind: input, shape index: {}]   ;;  %s1738_s5 = inlined_call_operand.vmem [shape: f32[1,8], index: 5, kind: input, shape index: {}]   ;;  %s1739_s6 = inlined_call_operand.<no memory space> [shape: f32[1,1], index: 6, kind: input, shape index: {}]   ;;  %s1740_s7 = inlined_call_operand.hbm [shape: f32[2,1,256], index: 7, kind: output, shape index: {}]  }
   0x1   :  { %v12_v0 = vstv %s1739_s6 }
   0x2   :  { %13 = vst [vmem:[#allocation5] sm:$0x1] %v12_v0 }
   0x3   :  { %14 = vsyncpa [#allocation7], 0 }
   0x4   :  { %16 = vsyncpa [#allocation7 + $0x1], 0 }
   0x5   :  { %17 = vsyncpa [#allocation8], 0 }
   0x6   :  { %19 = vsyncpa [#allocation8 + $0x1], 0  ;;  %s1405_s26 = smov 0   ;;  %s1407_s27 = smov 0  }
   0x7   :  { %s1409_s28 = smov 0   ;;  %s1411_s29 = smov 0  }
   0x8 LB: > { %s1426_s6 = sadd.s32 4294967295, %s1350_s29   ;;  %s1100_s30 = sadd.s32 4294967294, %s1350_s29   ;;  %s1350_s29 = sphi %s1411_s29, %s1750_s29   ;;  %s1346_s28 = sphi %s1409_s28, %s1749_s28   ;;  %s1342_s27 = sphi %s1407_s27, %s1748_s27   ;;  %s1338_s26 = sphi %s1405_s26, %s1747_s26  }
   0x9   : > { %s1430_s8 = sadd.s32 1, %s1350_s29   ;;  %s32_s9 = sadd.s32 1, %s1346_s28 }
   0xa   : > { %s29_s10 = ssub.s32 %s1350_s29, %s1430_s8  ;;  %p39_p0 = scmp.ne.s32.totalorder %s1346_s28, %s1342_s27 }
   0xb   : > { %p30_p1 = scmp.eq.s32.totalorder %s29_s10, 0  ;;  %p40_p2 = scmp.eq.s32.totalorder %s1350_s29, 0 }
   0xc   : > { %p45_p3 = scmp.ne.s32.totalorder %s1342_s27, %s1338_s26  ;;  %p46_p4 = scmp.eq.s32.totalorder %s1426_s6, 0 }
   0xd   : > { %s1442_s11 = scalar_select %p30_p1, %s1346_s28, %s32_s9  }
   0xe   : > { %p1444_p5 = por %p40_p2, %p39_p0  ;;  %p1448_p6 = por %p46_p4, %p45_p3 }
   0xf   : > { %p195_p7 = scmp.eq.s32.totalorder %s1426_s6, 1  ;;  %p201_p8 = scmp.eq.s32.totalorder %s1100_s30, 1 }
  0x10   : > { %p1138_p10 = scmp.lt.s32.totalorder %s1350_s29, 2  ;;  %s239_s16 = sand.u32 1, %s1346_s28  }
  0x11   : > { %p1455_p11 = por %p195_p7, %p39_p0  ;;  %p1459_p12 = por %p201_p8, %p45_p3 }
  0x12   : > { %s1125_s17 = sshll.u32 %s1350_s29, 4  ;;  %s1103_s18 = sshll.u32 %s239_s16, 4 }
  0x13   : > { %s248_s21 = scalar_lea.hbm %s1733_s0, %s1125_s17  ;;  %s243_s23 = scalar_lea.vmem [#allocation6], %s1103_s18 }
  0x14   : > { %s250_s22 = sshll.u32 %s248_s21, 4  ;;  %s252_s24 = sshll.u32 %s243_s23, 4  ;;  %s251_s22 = int_to_ptr.hbm [resolvable:$true] %s250_s22  ;;  %s253_s24 = int_to_ptr.vmem [resolvable:$true] %s252_s24 }
  0x15   : > { %p1470_p13 = pnand %p1138_p10, %p1444_p5  ;;  %p1106_p0 = scmp.ge.s32.totalorder %s1350_s29, 1 }
  0x16   : > { %p257_p1 = scmp.lt.s32.totalorder %s1350_s29, 3  ;;  %s240_s30 = scalar_lea.sflag [#allocation7], %s239_s16 }
  0x17   : > { %s1254_s9 = sshra.s32 %s251_s22, 4  ;;  %p1258_p3 = pneg %p1470_p13  ;;  %s1255_s9 = int_to_ptr.hbm [resolvable:$true] %s1254_s9 }
  0x18   : > { %s1256_s10 = scalar_lea.hbm %s1255_s9, 16  ;;  %s1261_s12 = scalar_lea.hbm %s1733_s0, 32 }
  0x19   : > { %p1257_p2 = scmp.ne.s32.totalorder %s1255_s9, %s1256_s10  ;;  %p1262_p5 = scmp.lt.s32.totalorder %s1255_s9, %s1733_s0 }
  0x1a   : > { %p1263_p8 = scmp.lt.s32.totalorder %s1261_s12, %s1256_s10 }
  0x1b   : > { %p1259_p4 = pnand %p1258_p3, %p1257_p2 }
  0x1c   : > { %p1264_p10 = por %p1263_p8, %p1262_p5 }
  0x1d   : > { %p1260_p7 = pneg %p1259_p4 }
  0x1f   : > { %p1265_p9 = pnand %p1264_p10, %p1260_p7 }
  0x21   : > { %1268 = shalt.err (!%p1265_p9)
}
  0x22   : > { %1133 = dma.hbm_to_vmem [thread:$0]  (!%p1470_p13), %s251_s22, 256, %s253_s24, %s240_s30  }
  0x23   : > { %p258_p2 = pnand %p1106_p0, %p257_p1 }
  0x24   : > { %s1491_s16 = sand.u32 (!%p258_p2), 1, %s1342_s27  }
  0x25   : > { %261 = sbr.rel (%p258_p2) target bundleno = 943 (0x3af), region = 48  ;;  %s1107_s21 = sshll.u32 (!%p258_p2), %s1491_s16, 4 }
  0x26   : > { %s264_s23 = scalar_lea.sflag (!%p258_p2), [#allocation7], %s1491_s16  ;;  %s1495_s9 = scalar_lea.vmem (!%p258_p2), [#allocation6], %s1107_s21 }
  0x2a   : > { %v299_v1 = vlaneseq }
  0x2b   : > { %1329 = dma.done.wait (%p1448_p6), %s264_s23, 256  }
  0x2c   : > { %1331 = vsyncadd (%p1448_p6), %s264_s23, 4294967040  ;;  %v300_v2 = vand.u32 127, %v299_v1  ;;  %v1352_v6 = vmov 0.0   ;;  %vm343_vm3 = vcmask 1043456   ;;  %s1353_s13 = smov 111   ;;  %s1354_s22 = smov 127  }
  0x2d   : > { %s1355_s24 = smov 15   ;;  %s1356_s25 = smov 113   ;;  %vm348_vm5 = vcmask 908288   ;;  %v339_v16 = vld [vmem:[%s1495_s9 + $0x8] sm:$0xf]  ;;  %v338_v17 = vld [vmem:[%s1495_s9] sm:$0xff] }
  0x2e   : > { %v301_v3 = vadd.s32 128, %v300_v2  ;;  %v306_v4 = vand.u32 15, %v300_v2  ;;  %s1357_s30 = smov 1   ;;  %s1358_s10 = smov 17   ;;  %v376_v22 = vld [vmem:[%s1495_s9 + $0x8] sm:$0xf] }
  0x2f   : > { %v400_v26 = vld [vmem:[%s1495_s9 + $0x8] sm:$0xf]  ;;  %vm408_vm6 = vcmask 924672   ;;  %vm440_vm7 = vcmask 1039360   ;;  %s1359_s17 = smov 16   ;;  %vm368_vm8 = vcmask 138240  }
  0x30   : > { %v313_v5 = vand.u32 15, %v301_v3  ;;  %vm326_vm0 = vcmp.ge.s32.totalorder %v306_v4, 1  ;;  %vm332_vm4 = vcmp.le.s32.totalorder %v306_v4, 14  ;;  %v436_v34 = vld [vmem:[%s1495_s9 + $0x8] sm:$0xf]  ;;  %663 = vst.msk [vmem:[#allocation2 + $0x18] sm:$0xff] %vm368_vm8, %v1352_v6 }
  0x31   : > { %v1503_v7 = vsel %vm326_vm0, 1.0, %v1352_v6  ;;  %v1519_v13 = vsel %vm332_vm4, 1.0, %v1352_v6  ;;  %v478_v43 = vld [vmem:[%s1495_s9 + $0xc] sm:$0xf]  ;;  %v477_v50 = vld [vmem:[%s1495_s9 + $0x4] sm:$0xff]  ;;  %vm461_vm9 = vcmask 7168  }
  0x32   : > { %vm327_vm1 = vcmp.ge.s32.totalorder %v313_v5, 1  ;;  %vm333_vm2 = vcmp.le.s32.totalorder %v313_v5, 14  ;;  %v509_v51 = vld [vmem:[%s1495_s9 + $0xc] sm:$0xf]  ;;  %vm428_vm10 = vcmask 121856   ;;  %s1360_s18 = smov 112  }
  0x33   : > { %v1506_v8 = vsel %vm327_vm1, 1.0, %v1352_v6  ;;  %v1510_v10 = vsel %vm333_vm2, 1.0, %v1352_v6  ;;  %v539_v62 = vld [vmem:[%s1495_s9 + $0xc] sm:$0xf]  ;;  %vm392_vm11 = vcmask 130048   ;;  %vm555_vm12 = vcmask 916480  }
  0x34   : > { %v342_v9 = vrot.slane %v1506_v8, 4  ;;  %v403_v12 = vrot.slane %v1510_v10, 4  ;;  %v563_v3 = vld [vmem:[%s1495_s9 + $0xc] sm:$0xf]  ;;  %vm609_vm13 = vcmask 293888   ;;  %vm661_vm14 = vcmask 1048440  }
  0x35   : > { %662 = vst.msk [vmem:[#allocation2] sm:$0xff] %vm661_vm14, %v1352_v6  ;;  %vm905_vm15 = vcmask 588800   ;;  %vm959_vm0 = vcmask 64512   ;;  %vm1006_vm1 = vcmask 1040384   ;;  %vm1011_vm2 = vcmp.lt.s32.totalorder %v299_v1, 256 }
  0x36   : > { %v344_v11 = vsel %vm343_vm3, %v1503_v7, %v342_v9  ;;  %v404_v14 = vsel %vm343_vm3, %v1519_v13, %v403_v12 }
  0x37   : > { %345 = vrot.lane.b32.xlu0 %v344_v11, %s1353_s13  ;;  %437 = vrot.lane.b32.xlu1 %v344_v11, %s1354_s22 }
  0x38   : > { %510 = vrot.lane.b32.xlu2 %v344_v11, %s1355_s24 }
  0x3f   : > { %405 = vrot.lane.b32.xlu0 %v404_v14, %s1356_s25  ;;  %479 = vrot.lane.b32.xlu1 %v404_v14, %s1357_s30 }
  0x40   : > { %564 = vrot.lane.b32.xlu2 %v404_v14, %s1358_s10 }
  0x92   : > { %v511_v48 = vpop.permute.xlu2 %510 }
  0x93   : > { %v512_v52 = vrot.slane %v511_v48, 4 }
  0x95   : > { %v517_v55 = vmul.f32 %v512_v52, %v509_v51  ;;  %v513_v61 = vsel %vm428_vm10, %v512_v52, %v511_v48  ;;  %v1361_v48 = vmov 0  }
  0x96   : > { %v516_v2 = vmul.f32 %v513_v61, %v477_v50  ;;  %1182 = vset.pattern.permute.xlu0 %v1361_v48  ;;  %1253 = vset.pattern.permute.xlu1 %v1361_v48 }
  0x9a   : > { %v565_v63 = vpop.permute.xlu2 %564 }
  0x9b   : > { %v566_v4 = vrot.slane %v565_v63, 4 }
  0x9d   : > { %v571_v11 = vmul.f32 %v566_v4, %v563_v3  ;;  %v592_v3 = vld [vmem:[%s1734_s1] sm:$0xff] }
  0xa9   : > { %v346_v15 = vpop.permute.xlu0 %345  ;;  %v438_v29 = vpop.permute.xlu1 %437 }
  0xaa   : > { %v347_v18 = vrot.slane %v346_v15, 4  ;;  %v439_v35 = vrot.slane %v438_v29, 4 }
  0xac   : > { %v349_v19 = vsel %vm348_vm5, %v347_v18, %v346_v15  ;;  %v353_v20 = vmul.f32 %v347_v18, %v339_v16  ;;  %v445_v38 = vmul.f32 %v439_v35, %v436_v34  ;;  %v441_v39 = vsel %vm440_vm7, %v439_v35, %v438_v29 }
  0xad   : > { %v352_v21 = vmul.f32 %v349_v19, %v338_v17  ;;  %v444_v42 = vmul.f32 %v441_v39, %v338_v17  ;;  %v567_v16 = vsel %vm368_vm8, %v566_v4, %v565_v63 }
  0xae   : > { %358 = vst [vmem:[#allocation1 + $0x10] ss:$2 sm:$0xff] %v353_v20  ;;  %v570_v18 = vmul.f32 %v567_v16, %v477_v50 }
  0xaf   : > { %356 = vst [vmem:[#allocation1] ss:$2 sm:$0xff] %v352_v21 }
  0xb1   : > { %v406_v23 = vpop.permute.xlu0 %405  ;;  %v480_v40 = vpop.permute.xlu1 %479 }
  0xb2   : > { %v407_v27 = vrot.slane %v406_v23, 4  ;;  %v481_v44 = vrot.slane %v480_v40, 4 }
  0xb4   : > { %v413_v30 = vmul.f32 %v407_v27, %v400_v26  ;;  %v409_v31 = vsel %vm408_vm6, %v407_v27, %v406_v23  ;;  %v486_v47 = vmul.f32 %v481_v44, %v478_v43  ;;  %v482_v56 = vsel %vm461_vm9, %v481_v44, %v480_v40 }
  0xb5   : > { %v361_v24 = vld.sshfl [vmem:[#allocation1 + $0x10] sm:$0xff pattern:$0x75316420]  ;;  %v412_v33 = vmul.f32 %v409_v31, %v338_v17  ;;  %v485_v58 = vmul.f32 %v482_v56, %v477_v50 }
  0xb6   : > { %v1530_v25 = vld.sshfl [vmem:[#allocation1] sm:$0xff pattern:$0x75316420]  ;;  %366 = vrot.lane.b32.xlu2 %v361_v24, %s1358_s10  ;;  %382 = vst [vmem:[#allocation1 + $0x11] ss:$2 sm:$0xff] %v376_v22 }
  0xb7   : > { %v360_v28 = vld.sshfl [vmem:[#allocation1 + $0x8] sm:$0xff pattern:$0x75316420] }
  0xb8   : > { %364 = vrot.lane.b32.xlu1 %v360_v28, %s1358_s10  ;;  %380 = vst [vmem:[#allocation1 + $0x1] ss:$2 sm:$0xff] %v338_v17 }
  0xbd   : > { %v385_v32 = vld.sshfl [vmem:[#allocation1 + $0x10] sm:$0xff pattern:$0x75316420] }
  0xbe   : > { %418 = vst [vmem:[#allocation1 + $0x10] ss:$2 sm:$0xff] %v413_v30 }
  0xbf   : > { %v384_v36 = vld.sshfl [vmem:[#allocation1 + $0x8] sm:$0xff pattern:$0x75316420]  ;;  %v1537_v37 = vld.sshfl [vmem:[#allocation1] sm:$0xff pattern:$0x75316420] }
  0xc0   : > { %390 = vrot.lane.b32.xlu1 %v385_v32, %s1359_s17  ;;  %388 = vrot.lane.b32.xlu0 %v384_v36, %s1359_s17  ;;  %416 = vst [vmem:[#allocation1] ss:$2 sm:$0xff] %v412_v33 }
  0xc5   : > { %v421_v41 = vld.sshfl [vmem:[#allocation1 + $0x10] sm:$0xff pattern:$0x75316420] }
  0xc6   : > { %451 = vst [vmem:[#allocation1 + $0x11] ss:$2 sm:$0xff] %v445_v38 }
  0xc7   : > { %v420_v45 = vld.sshfl [vmem:[#allocation1 + $0x8] sm:$0xff pattern:$0x75316420]  ;;  %v419_v46 = vld.sshfl [vmem:[#allocation1] sm:$0xff pattern:$0x75316420] }
  0xc8   : > { %426 = vrot.lane.b32.xlu0 %v421_v41, %s1355_s24  ;;  %424 = vrot.lane.b32.xlu2 %v420_v45, %s1355_s24  ;;  %449 = vst [vmem:[#allocation1 + $0x1] ss:$2 sm:$0xff] %v444_v42 }
  0xcd   : > { %v454_v49 = vld.sshfl [vmem:[#allocation1 + $0x10] sm:$0xff pattern:$0x75316420] }
  0xce   : > { %492 = vst [vmem:[#allocation1 + $0x11] ss:$2 sm:$0xff] %v486_v47 }
  0xcf   : > { %v452_v53 = vld.sshfl [vmem:[#allocation1] sm:$0xff pattern:$0x75316420]  ;;  %v453_v54 = vld.sshfl [vmem:[#allocation1 + $0x8] sm:$0xff pattern:$0x75316420] }
  0xd0   : > { %422 = vrot.lane.b32.xlu2 %v419_v46, %s1355_s24  ;;  %457 = vrot.lane.b32.xlu1 %v453_v54, %s1357_s30  ;;  %470 = vst [vmem:[#allocation1] ss:$2 sm:$0xff] %v477_v50  ;;  %v1188_v54 = vpack.i.bf16 %v1506_v8, %v1503_v7 }
  0xd5   : > { %v495_v57 = vld.sshfl [vmem:[#allocation1 + $0x10] sm:$0xff pattern:$0x75316420] }
  0xd6   : > { %522 = vst [vmem:[#allocation1 + $0x10] ss:$2 sm:$0xff] %v517_v55 }
  0xd7   : > { %v471_v59 = vld.sshfl [vmem:[#allocation1] sm:$0xff pattern:$0x75316420]  ;;  %v472_v60 = vld.sshfl [vmem:[#allocation1 + $0x8] sm:$0xff pattern:$0x75316420] }
  0xd8   : > { %459 = vrot.lane.b32.xlu2 %v454_v49, %s1357_s30  ;;  %490 = vst [vmem:[#allocation1 + $0x1] ss:$2 sm:$0xff] %v485_v58  ;;  %v603_v49 = vld [vmem:[%s1735_s2] sm:$0xff] }
  0xd9   : > { %475 = vst [vmem:[#allocation3 + $0x48] sm:$0xf] %v471_v59 }
  0xda   : > { %476 = vst [vmem:[#allocation3 + $0x28] sm:$0xf] %v472_v60 }
  0xdd   : > { %v525_v0 = vld.sshfl [vmem:[#allocation1 + $0x10] sm:$0xff pattern:$0x75316420] }
  0xde   : > { %545 = vst [vmem:[#allocation1 + $0x11] ss:$2 sm:$0xff] %v539_v62  ;;  %530 = vrot.lane.b32.xlu0 %v525_v0, %s1356_s25 }
  0xdf   : > { %v494_v5 = vld.sshfl [vmem:[#allocation1 + $0x8] sm:$0xff pattern:$0x75316420]  ;;  %v493_v9 = vld.sshfl [vmem:[#allocation1] sm:$0xff pattern:$0x75316420] }
  0xe0   : > { %500 = vrot.lane.b32.xlu2 %v495_v57, %s1354_s22  ;;  %498 = vrot.lane.b32.xlu1 %v494_v5, %s1354_s22  ;;  %520 = vst [vmem:[#allocation1] ss:$2 sm:$0xff] %v516_v2 }
  0xe5   : > { %v548_v12 = vld.sshfl [vmem:[#allocation1 + $0x10] sm:$0xff pattern:$0x75316420] }
  0xe6   : > { %496 = vrot.lane.b32.xlu0 %v493_v9, %s1354_s22  ;;  %576 = vst [vmem:[#allocation1 + $0x10] ss:$2 sm:$0xff] %v571_v11 }
  0xe7   : > { %v523_v14 = vld.sshfl [vmem:[#allocation1] sm:$0xff pattern:$0x75316420]  ;;  %v524_v15 = vld.sshfl [vmem:[#allocation1 + $0x8] sm:$0xff pattern:$0x75316420] }
  0xe8   : > { %553 = vrot.lane.b32.xlu2 %v548_v12, %s1360_s18  ;;  %543 = vst [vmem:[#allocation1 + $0x1] ss:$2 sm:$0xff] %v477_v50 }
  0xed   : > { %v579_v17 = vld.sshfl [vmem:[#allocation1 + $0x10] sm:$0xff pattern:$0x75316420] }
  0xee   : > { %584 = vrot.lane.b32.xlu1 %v579_v17, %s1353_s13  ;;  %526 = vrot.lane.b32.xlu0 %v523_v14, %s1356_s25 }
  0xef   : > { %v546_v19 = vld.sshfl [vmem:[#allocation1] sm:$0xff pattern:$0x75316420]  ;;  %v547_v20 = vld.sshfl [vmem:[#allocation1 + $0x8] sm:$0xff pattern:$0x75316420] }
  0xf0   : > { %528 = vrot.lane.b32.xlu2 %v524_v15, %s1356_s25  ;;  %574 = vst [vmem:[#allocation1] ss:$2 sm:$0xff] %v570_v18 }
  0xf6   : > { %551 = vrot.lane.b32.xlu1 %v547_v20, %s1360_s18  ;;  %v1618_v20 = vld [vmem:[#allocation2] sm:$0xff] }
  0xf7   : > { %v578_v21 = vld.sshfl [vmem:[#allocation1 + $0x8] sm:$0xff pattern:$0x75316420]  ;;  %v577_v22 = vld.sshfl [vmem:[#allocation1] sm:$0xff pattern:$0x75316420] }
  0xf8   : > { %386 = vrot.lane.b32.xlu2 %v1537_v37, %s1359_s17  ;;  %582 = vrot.lane.b32.xlu0 %v578_v21, %s1353_s13 }
  0xfe   : > { %549 = vrot.lane.b32.xlu1 %v546_v19, %s1360_s18 }
 0x100   : > { %580 = vrot.lane.b32.xlu0 %v577_v22, %s1353_s13  ;;  %1189 = vrot.lane.b32.xlu2 %v1188_v54, %s1355_s24 }
 0x106   : > { %362 = vrot.lane.b32.xlu1 %v1530_v25, %s1358_s10 }
 0x108   : > { %455 = vrot.lane.b32.xlu0 %v452_v53, %s1357_s30  ;;  %v1183_v53 = vpack.i.bf16 %v1510_v10, %v1519_v13  ;;  %1199 = vrot.lane.b32.xlu2 %v1188_v54, %s1354_s22 }
 0x10e   : > { %1184 = vrot.lane.b32.xlu1 %v1183_v53, %s1358_s10 }
 0x110   : > { %v367_v23 = vpop.permute.xlu2 %366  ;;  %606 = vperm.xlu0 %1182, %v603_v49  }
 0x116   : > { %1194 = vrot.lane.b32.xlu1 %v1183_v53, %s1357_s30 }
 0x118   : > { %1204 = vrot.lane.b32.xlu0 %v1183_v53, %s1356_s25 }
 0x11e   : > { %1209 = vrot.lane.b32.xlu1 %v1188_v54, %s1353_s13 }
 0x122   : > { %v425_v24 = vpop.permute.xlu2 %424 }
 0x12a   : > { %v1574_v26 = vpop.permute.xlu1 %364  ;;  %v423_v27 = vpop.permute.xlu2 %422 }
 0x12b   : > { %v370_v28 = vsel %vm368_vm8, %v1574_v26, %v367_v23  ;;  %v429_v29 = vsel %vm428_vm10, %v423_v27, %v425_v24 }
 0x12c   : > { %374 = vst [vmem:[#allocation3] sm:$0xf] %v370_v28  ;;  %v806_v28 = vld [vmem:[#allocation2 + $0x18] sm:$0xff] }
 0x12d   : > { %433 = vst [vmem:[#allocation3 + $0x18] sm:$0xf] %v429_v29 }
 0x132   : > { %v391_v30 = vpop.permute.xlu1 %390  ;;  %v389_v31 = vpop.permute.xlu0 %388 }
 0x133   : > { %v394_v32 = vsel %vm392_vm11, %v389_v31, %v391_v30  ;;  %v460_v25 = vpop.permute.xlu2 %459 }
 0x134   : > { %398 = vst [vmem:[#allocation3] sm:$0xf0] %v394_v32 }
 0x13a   : > { %v427_v33 = vpop.permute.xlu0 %426 }
 0x13b   : > { %v430_v34 = vsel %vm428_vm10, %v425_v24, %v427_v33  ;;  %v501_v35 = vpop.permute.xlu2 %500  ;;  %v594_v9 = vld [vmem:[#allocation3] sm:$0xff] }
 0x13c   : > { %434 = vst [vmem:[#allocation3 + $0x10] sm:$0xf] %v430_v34 }
 0x142   : > { %v458_v36 = vpop.permute.xlu1 %457 }
 0x143   : > { %v554_v37 = vpop.permute.xlu2 %553  ;;  %v463_v38 = vsel %vm461_vm9, %v458_v36, %v460_v25 }
 0x144   : > { %467 = vst [vmem:[#allocation3 + $0x10] sm:$0xf0] %v463_v38 }
 0x14b   : > { %v529_v39 = vpop.permute.xlu2 %528  ;;  %v596_v0 = vld [vmem:[#allocation3 + $0x10] sm:$0xff] }
 0x150   : > { %v531_v40 = vpop.permute.xlu0 %530 }
 0x151   : > { %v533_v41 = vsel %vm408_vm6, %v529_v39, %v531_v40 }
 0x152   : > { %537 = vst [vmem:[#allocation3 + $0x20] sm:$0xf] %v533_v41  ;;  %v499_v42 = vpop.permute.xlu1 %498 }
 0x153   : > { %v503_v43 = vsel %vm440_vm7, %v499_v42, %v501_v35  ;;  %v387_v44 = vpop.permute.xlu2 %386 }
 0x154   : > { %507 = vst [vmem:[#allocation3 + $0x28] sm:$0xf0] %v503_v43  ;;  %v393_v45 = vsel %vm392_vm11, %v387_v44, %v389_v31 }
 0x155   : > { %397 = vst [vmem:[#allocation3 + $0x30] sm:$0xf0] %v393_v45 }
 0x158   : > { %v497_v46 = vpop.permute.xlu0 %496 }
 0x159   : > { %v502_v47 = vsel %vm440_vm7, %v497_v46, %v499_v42 }
 0x15a   : > { %506 = vst [vmem:[#allocation3 + $0x48] sm:$0xf0] %v502_v47 }
 0x15b   : > { %v598_v61 = vld [vmem:[#allocation3 + $0x28] sm:$0xff]  ;;  %v1190_v16 = vpop.permute.xlu2 %1189 }
 0x15c   : > { %v1192_v33 = vunpack.i.h.bf16 %v1190_v16  ;;  %v1191_v34 = vunpack.i.l.bf16 %v1190_v16 }
 0x15e   : > { %v817_v41 = vmul.f32 %v1192_v33, %v806_v28 }
 0x160   : > { %v585_v50 = vpop.permute.xlu1 %584  ;;  %v527_v51 = vpop.permute.xlu0 %526 }
 0x161   : > { %v532_v52 = vsel %vm408_vm6, %v527_v51, %v529_v39  ;;  %v597_v12 = vld [vmem:[#allocation3 + $0x48] sm:$0xff]  ;;  %v811_v39 = vsel %vm428_vm10, %v1191_v34, %v1192_v33 }
 0x162   : > { %536 = vst [vmem:[#allocation3 + $0x8] sm:$0xf] %v532_v52 }
 0x163   : > { %v1615_v18 = vpop.permute.xlu2 %1199 }
 0x164   : > { %v1201_v19 = vunpack.i.l.bf16 %v1615_v18 }
 0x166   : > { %v753_v22 = vmul.f32 %v1201_v19, %v1618_v20 }
 0x168   : > { %v552_v55 = vpop.permute.xlu1 %551  ;;  %759 = vrot.lane.b32.xlu0 %v753_v22, %s1357_s30 }
 0x169   : > { %v557_v56 = vsel %vm555_vm12, %v552_v55, %v554_v37 }
 0x16a   : > { %561 = vst [vmem:[#allocation3 + $0x20] sm:$0xf0] %v557_v56  ;;  %v583_v57 = vpop.permute.xlu0 %582 }
 0x16b   : > { %v587_v58 = vsel %vm348_vm5, %v583_v57, %v585_v50 }
 0x16c   : > { %591 = vst [vmem:[#allocation3 + $0x38] sm:$0xf] %v587_v58 }
 0x170   : > { %v550_v10 = vpop.permute.xlu1 %549 }
 0x171   : > { %v556_v13 = vsel %vm555_vm12, %v550_v10, %v552_v55  ;;  %v600_v60 = vld [vmem:[#allocation3 + $0x20] sm:$0xff] }
 0x172   : > { %560 = vst [vmem:[#allocation3 + $0x8] sm:$0xf0] %v556_v13  ;;  %v581_v59 = vpop.permute.xlu0 %580 }
 0x173   : > { %v586_v7 = vsel %vm348_vm5, %v581_v59, %v583_v57  ;;  %v602_v8 = vld [vmem:[#allocation3 + $0x38] sm:$0xf] }
 0x174   : > { %590 = vst [vmem:[#allocation3 + $0x40] sm:$0xf] %v586_v7  ;;  %1115 = vmatpush.msk.msra.mxu1 %vm343_vm3, %v602_v8 }
 0x176   : > { %651 = vmatpush.msra.mxu1 %v600_v60 }
 0x178   : > { %652 = vmatpush.msra.mxu1 %v598_v61  ;;  %v363_v62 = vpop.permute.xlu1 %362  ;;  %v1202_v61 = vunpack.i.h.bf16 %v1615_v18 }
 0x179   : > { %v369_v63 = vsel %vm368_vm8, %v363_v62, %v1574_v26  ;;  %v599_v11 = vld [vmem:[#allocation3 + $0x8] sm:$0xff] }
 0x17a   : > { %373 = vst [vmem:[#allocation3 + $0x30] sm:$0xf] %v369_v63  ;;  %653 = vmatpush.msra.mxu1 %v596_v0  ;;  %v456_v2 = vpop.permute.xlu0 %455 }
 0x17b   : > { %v462_v4 = vsel %vm461_vm9, %v456_v2, %v458_v36  ;;  %v601_v5 = vld [vmem:[#allocation3 + $0x40] sm:$0xf]  ;;  %v749_v2 = vsel %vm440_vm7, %v1201_v19, %v1202_v61 }
 0x17c   : > { %466 = vst [vmem:[#allocation3 + $0x18] sm:$0xf0] %v462_v4  ;;  %1113 = vmatpush.msk.msra.mxu0 %vm343_vm3, %v601_v5  ;;  %654 = vmatpush.msra.mxu1 %v594_v9  ;;  %v899_v4 = vld [vmem:[%s1737_s4] sm:$0xff] }
 0x17d   : > { %1116 = vmatmul.msk.f32.vlgmr.msra.gmra.mxu1 %vm609_vm13, %v592_v3 }
 0x17e   : > { %631 = vmatpush.msra.mxu0 %v599_v11 }
 0x180   : > { %632 = vmatpush.msra.mxu0 %v597_v12  ;;  %v1185_v26 = vpop.permute.xlu1 %1184 }
 0x181   : > { %v593_v15 = vld [vmem:[#allocation3 + $0x30] sm:$0xff]  ;;  %v1187_v6 = vunpack.i.h.bf16 %v1185_v26  ;;  %v1186_v27 = vunpack.i.l.bf16 %v1185_v26 }
 0x182   : > { %v607_v17 = vpop.permute.xlu0 %606 }
 0x183   : > { %v595_v14 = vld [vmem:[#allocation3 + $0x18] sm:$0xff]  ;;  %v858_v31 = vsel %vm368_vm8, %v1186_v27, %v1187_v6  ;;  %v864_v25 = vmul.f32 %v1187_v6, %v806_v28 }
 0x184   : > { %633 = vmatpush.msra.mxu0 %v595_v14 }
 0x186   : > { %634 = vmatpush.msra.mxu0 %v593_v15 }
 0x187   : > { %1114 = vmatmul.msk.f32.vlgmr.msra.gmra.mxu0 %vm609_vm13, %v592_v3 }
 0x188   : > { %v1195_v35 = vpop.permute.xlu1 %1194 }
 0x189   : > { %v1196_v48 = vunpack.i.l.bf16 %v1195_v35  ;;  %v1197_v52 = vunpack.i.h.bf16 %v1195_v35 }
 0x18a   : > { %v1205_v21 = vpop.permute.xlu0 %1204 }
 0x18b   : > { %v1206_v23 = vunpack.i.l.bf16 %v1205_v21  ;;  %v1207_v51 = vunpack.i.h.bf16 %v1205_v21  ;;  %v782_v58 = vsel %vm461_vm9, %v1196_v48, %v1197_v52  ;;  %v788_v7 = vmul.f32 %v1197_v52, %v806_v28 }
 0x18d   : > { %v724_v24 = vmul.f32 %v1206_v23, %v1618_v20  ;;  %v720_v57 = vsel %vm408_vm6, %v1206_v23, %v1207_v51 }
 0x18f   : > { %730 = vrot.lane.b32.xlu2 %v724_v24, %s1355_s24 }
 0x190   : > { %v1210_v45 = vpop.permute.xlu1 %1209 }
 0x191   : > { %v1212_v49 = vunpack.i.h.bf16 %v1210_v45  ;;  %v1211_v50 = vunpack.i.l.bf16 %v1210_v45 }
 0x193   : > { %v673_v54 = vsel %vm348_vm5, %v1211_v50, %v1212_v49  ;;  %v677_v9 = vmul.f32 %v1211_v50, %v1618_v20 }
 0x1da   : > { %v760_v18 = vpop.permute.xlu0 %759 }
 0x1e9   : > { %v731_v12 = vpop.permute.xlu2 %730 }
 0x1fa   : > { %v656_v29 = vpop.f32.mrf.mxu1 }
 0x1fb   : > { %v657_v30 = vadd.f32 %v656_v29, %v607_v17 }
 0x1fd   : > { %v1627_v32 = vmax.f32 %v657_v30, 0.0 }
 0x1ff   : > { %v1213_v36 = vpack.i.bf16 %v806_v28, %v1627_v32  ;;  %v863_v37 = vmul.f32 %v858_v31, %v1627_v32  ;;  %v816_v43 = vmul.f32 %v811_v39, %v1627_v32  ;;  %v679_v10 = vmul.f32 %v1212_v49, %v1627_v32 }
 0x200   : > { %v726_v59 = vmul.f32 %v1207_v51, %v1627_v32  ;;  %v787_v60 = vmul.f32 %v782_v58, %v1627_v32  ;;  %v755_v5 = vmul.f32 %v1202_v61, %v1627_v32 }
 0x201   : > { %1214 = vrot.lane.b32.xlu0 %v1213_v36, %s1360_s18  ;;  %v1223_v38 = vpack.i.bf16 %v864_v25, %v863_v37  ;;  %v1228_v46 = vpack.i.bf16 %v817_v41, %v816_v43 }
 0x202   : > { %v1233_v0 = vpack.i.bf16 %v788_v7, %v787_v60 }
 0x203   : > { %1224 = vrot.lane.b32.xlu2 %v1223_v38, %s1353_s13 }
 0x204   : > { %v636_v40 = vpop.f32.mrf.mxu0 }
 0x205   : > { %v637_v42 = vadd.f32 %v636_v40, %v607_v17 }
 0x207   : > { %v1635_v44 = vmax.f32 %v637_v42, 0.0 }
 0x209   : > { %839 = vrot.lane.b32.xlu0 %v1635_v44, %s1360_s18  ;;  %v1218_v47 = vpack.i.bf16 %v1627_v32, %v1635_v44  ;;  %v786_v53 = vmul.f32 %v1196_v48, %v1635_v44  ;;  %v815_v55 = vmul.f32 %v1191_v34, %v1635_v44  ;;  %v862_v56 = vmul.f32 %v1186_v27, %v1635_v44 }
 0x20a   : > { %v678_v13 = vmul.f32 %v673_v54, %v1635_v44  ;;  %v725_v8 = vmul.f32 %v720_v57, %v1635_v44  ;;  %v754_v3 = vmul.f32 %v749_v2, %v1635_v44 }
 0x20b   : > { %1229 = vrot.lane.b32.xlu2 %v1228_v46, %s1356_s25  ;;  %1219 = vrot.lane.b32.xlu1 %v1218_v47, %s1359_s17 }
 0x20c   : > { %v1248_v62 = vpack.i.bf16 %v679_v10, %v678_v13  ;;  %v1243_v63 = vpack.i.bf16 %v726_v59, %v725_v8  ;;  %v1238_v11 = vpack.i.bf16 %v755_v5, %v754_v3  ;;  %v952_v59 = vld [vmem:[#allocation5] sm:$0x1] }
 0x211   : > { %792 = vrot.lane.b32.xlu0 %v786_v53, %s1354_s22 }
 0x213   : > { %821 = vrot.lane.b32.xlu2 %v815_v55, %s1356_s25  ;;  %868 = vrot.lane.b32.xlu1 %v862_v56, %s1353_s13  ;;  %v880_v56 = vld [vmem:[%s1736_s3] sm:$0xff] }
 0x219   : > { %1249 = vrot.lane.b32.xlu0 %v1248_v62, %s1358_s10 }
 0x21b   : > { %1244 = vrot.lane.b32.xlu2 %v1243_v63, %s1355_s24  ;;  %1234 = vrot.lane.b32.xlu1 %v1233_v0, %s1354_s22  ;;  %v951_v0 = vld [vmem:[%s1738_s5] sm:$0x1]  ;;  %s1304_s24 = scalar_lea.hbm %s1740_s7, 4 }
 0x221   : > { %902 = vperm.xlu0 %1182, %v899_v4  }
 0x223   : > { %1239 = vrot.lane.b32.xlu1 %v1238_v11, %s1357_s30  ;;  %683 = vrot.lane.b32.xlu2 %v677_v9, %s1358_s10  ;;  %s1108_s30 = sshll.u32 %s1491_s16, 1  ;;  %s1122_s10 = sshll.u32 %s1426_s6, 1 }
 0x224   : > { %s1025_s12 = scalar_lea.hbm %s1740_s7, %s1122_s10  ;;  %s298_s19 = scalar_lea.vmem [#allocation9], %s1108_s30 }
 0x225   : > { %s1027_s20 = sshll.u32 %s298_s19, 4  ;;  %s1029_s21 = sshll.u32 %s1025_s12, 4  ;;  %s1028_s20 = int_to_ptr.vmem [resolvable:$true] %s1027_s20  ;;  %s1030_s21 = int_to_ptr.hbm [resolvable:$true] %s1029_s21 }
 0x226   : > { %s1015_s6 = scalar_lea.sflag [#allocation8], %s1491_s16  ;;  %s1298_s23 = sshra.s32 %s1030_s21, 4  ;;  %s1299_s23 = int_to_ptr.hbm [resolvable:$true] %s1298_s23 }
 0x227   : > { %s1300_s9 = scalar_lea.hbm %s1299_s23, 2  ;;  %p1305_p0 = scmp.lt.s32.totalorder %s1299_s23, %s1740_s7 }
 0x228   : > { %p1301_p6 = scmp.ne.s32.totalorder %s1299_s23, %s1300_s9  ;;  %p1306_p1 = scmp.lt.s32.totalorder %s1304_s24, %s1300_s9 }
 0x22a   : > { %p1302_p9 = pnand %p1301_p6, %p1455_p11  ;;  %p1307_p3 = por %p1306_p1, %p1305_p0 }
 0x22b   : > { %701 = vrot.lane.b32.xlu1 %v1618_v20, %s1359_s17 }
 0x22c   : > { %p1303_p13 = pneg %p1302_p9 }
 0x22e   : > { %p1308_p4 = pnand %p1307_p3, %p1303_p13 }
 0x233   : > { %955 = vperm.xlu1 %1253, %v952_v59  }
 0x25d   : > { %v1225_v14 = vpop.permute.xlu2 %1224 }
 0x25e   : > { %v1227_v15 = vunpack.i.h.bf16 %v1225_v14  ;;  %v1226_v16 = vunpack.i.l.bf16 %v1225_v14 }
 0x260   : > { %v875_v17 = vsel %vm348_vm5, %v1226_v16, %v1227_v15 }
 0x261   : > { %936 = vmatpush.msra.mxu3 %v875_v17 }
 0x265   : > { %v1230_v19 = vpop.permute.xlu2 %1229 }
 0x266   : > { %v1232_v22 = vunpack.i.h.bf16 %v1230_v19  ;;  %v1231_v23 = vunpack.i.l.bf16 %v1230_v19 }
 0x268   : > { %v828_v27 = vsel %vm408_vm6, %v1231_v23, %v1232_v22 }
 0x26d   : > { %v822_v31 = vpop.permute.xlu2 %821 }
 0x26e   : > { %v827_v33 = vsel %vm408_vm6, %v822_v31, %v1231_v23 }
 0x273   : > { %v1215_v21 = vpop.permute.xlu0 %1214 }
 0x274   : > { %v1217_v24 = vunpack.i.h.bf16 %v1215_v21  ;;  %v1216_v26 = vunpack.i.l.bf16 %v1215_v21 }
 0x275   : > { %v1245_v40 = vpop.permute.xlu2 %1244 }
 0x276   : > { %v846_v6 = vsel %vm555_vm12, %v1216_v26, %v1217_v24  ;;  %v1247_v42 = vunpack.i.h.bf16 %v1245_v40  ;;  %v1246_v43 = vunpack.i.l.bf16 %v1245_v40 }
 0x277   : > { %937 = vmatpush.msra.mxu3 %v846_v6 }
 0x279   : > { %938 = vmatpush.msra.mxu3 %v828_v27 }
 0x27b   : > { %v840_v28 = vpop.permute.xlu0 %839 }
 0x27c   : > { %v845_v25 = vsel %vm555_vm12, %v840_v28, %v1216_v26 }
 0x27d   : > { %v1220_v20 = vpop.permute.xlu1 %1219  ;;  %v684_v10 = vpop.permute.xlu2 %683 }
 0x27e   : > { %v1222_v48 = vunpack.i.h.bf16 %v1220_v20  ;;  %v1221_v49 = vunpack.i.l.bf16 %v1220_v20 }
 0x280   : > { %v708_v54 = vsel %vm392_vm11, %v1221_v49, %v1222_v48 }
 0x283   : > { %v793_v34 = vpop.permute.xlu0 %792 }
 0x285   : > { %v869_v29 = vpop.permute.xlu1 %868 }
 0x286   : > { %v874_v30 = vsel %vm348_vm5, %v869_v29, %v1226_v16 }
 0x287   : > { %916 = vmatpush.msra.mxu2 %v874_v30 }
 0x289   : > { %917 = vmatpush.msra.mxu2 %v845_v25 }
 0x28b   : > { %918 = vmatpush.msra.mxu2 %v827_v33  ;;  %v1250_v47 = vpop.permute.xlu0 %1249 }
 0x28c   : > { %v1252_v52 = vunpack.i.h.bf16 %v1250_v47  ;;  %v1251_v53 = vunpack.i.l.bf16 %v1250_v47 }
 0x28d   : > { %v1235_v35 = vpop.permute.xlu1 %1234 }
 0x28e   : > { %v1237_v36 = vunpack.i.h.bf16 %v1235_v35  ;;  %v1236_v37 = vunpack.i.l.bf16 %v1235_v35  ;;  %v690_v58 = vsel %vm368_vm8, %v1251_v53, %v1252_v52  ;;  %v689_v13 = vsel %vm368_vm8, %v684_v10, %v1251_v53 }
 0x290   : > { %v798_v38 = vsel %vm440_vm7, %v793_v34, %v1236_v37  ;;  %v799_v39 = vsel %vm440_vm7, %v1236_v37, %v1237_v36 }
 0x291   : > { %919 = vmatpush.msra.mxu2 %v798_v38  ;;  %939 = vmatpush.msra.mxu3 %v799_v39 }
 0x293   : > { %920 = vmatpush.msra.mxu2 %v1635_v44  ;;  %940 = vmatpush.msra.mxu3 %v1627_v32  ;;  %v736_v44 = vsel %vm428_vm10, %v731_v12, %v1246_v43  ;;  %v737_v32 = vsel %vm428_vm10, %v1246_v43, %v1247_v42  ;;  %v903_v7 = vpop.permute.xlu0 %902 }
 0x295   : > { %v1240_v41 = vpop.permute.xlu1 %1239 }
 0x296   : > { %v1242_v45 = vunpack.i.h.bf16 %v1240_v41  ;;  %v1241_v46 = vunpack.i.l.bf16 %v1240_v41 }
 0x298   : > { %v765_v50 = vsel %vm461_vm9, %v760_v18, %v1241_v46  ;;  %v766_v51 = vsel %vm461_vm9, %v1241_v46, %v1242_v45 }
 0x299   : > { %921 = vmatpush.msra.mxu2 %v765_v50  ;;  %941 = vmatpush.msra.mxu3 %v766_v51 }
 0x29b   : > { %922 = vmatpush.msra.mxu2 %v736_v44  ;;  %942 = vmatpush.msra.mxu3 %v737_v32 }
 0x29d   : > { %v702_v55 = vpop.permute.xlu1 %701  ;;  %943 = vmatpush.msra.mxu3 %v708_v54 }
 0x29e   : > { %v707_v57 = vsel %vm392_vm11, %v702_v55, %v1221_v49 }
 0x29f   : > { %923 = vmatpush.msra.mxu2 %v707_v57  ;;  %944 = vmatpush.msra.mxu3 %v690_v58 }
 0x2a0   : > { %1118 = vmatmul.msk.f32.vlgmr.msra.gmra.mxu3 %vm905_vm15, %v880_v56 }
 0x2a1   : > { %924 = vmatpush.msra.mxu2 %v689_v13 }
 0x2a2   : > { %1117 = vmatmul.msk.f32.vlgmr.msra.gmra.mxu2 %vm905_vm15, %v880_v56 }
 0x2a5   : > { %v956_v3 = vpop.permute.xlu1 %955 }
 0x2a6   : > { %v958_v4 = vperm.slane %v956_v3, 0 }
 0x323   : > { %v946_v8 = vpop.f32.mrf.mxu3 }
 0x324   : > { %v947_v60 = vadd.f32 %v946_v8, %v903_v7 }
 0x325   : > { %v926_v61 = vpop.f32.mrf.mxu2 }
 0x326   : > { %v950_v62 = vmax.f32 %v947_v60, 0.0  ;;  %v927_v63 = vadd.f32 %v926_v61, %v903_v7 }
 0x328   : > { %v949_v2 = vmax.f32 %v927_v63, 0.0  ;;  %998 = vmatpush.msrb.mxu1 %v950_v62 }
 0x329   : > { %1120 = vmatmul.msk.f32.vlgmr.msrb.gmra.mxu1 %vm959_vm0, %v951_v0 }
 0x32a   : > { %978 = vmatpush.msrb.mxu0 %v949_v2 }
 0x32b   : > { %1119 = vmatmul.msk.f32.vlgmr.msrb.gmra.mxu0 %vm959_vm0, %v951_v0 }
 0x3a6   : > { %v1000_v5 = vpop.f32.mrf.mxu1 }
 0x3a7   : > { %v1001_v9 = vadd.f32 %v1000_v5, %v958_v4 }
 0x3a8   : > { %v980_v11 = vpop.f32.mrf.mxu0 }
 0x3a9   : > { %v1005_v12 = vrot.slane %v1001_v9, 7  ;;  %v981_v14 = vadd.f32 %v980_v11, %v958_v4 }
 0x3ab   : > { %v1007_v15 = vsel %vm1006_vm1, %v981_v14, %v1005_v12 }
 0x3ac   : > { %1013 = vst.msk [vmem:[%s298_s19] sm:$0x3] %vm1011_vm2, %v1007_v15 }
 0x3ad   : > { %1311 = shalt.err (!%p1308_p4)
}
 0x3ae   : > { %1128 = dma.vmem_to_hbm [thread:$0]  (%p1455_p11), %s1028_s20, 32, %s1030_s21, %s1015_s6  }
 0x3af PF: > { %s1041_s16 = sand.u32 1, %s1338_s26   ;;  %p1746_p7 = scmp.ge.s32.totalorder %s1350_s29, 2 }
 0x3b0   : > { %s1042_s10 = scalar_lea.sflag [#allocation8], %s1041_s16 }
 0x3b1   : > { %p1135_p5 = pnand %p1746_p7, %p1459_p12 }
 0x3b3   : > { %p1136_p8 = pneg %p1135_p5 }
 0x3b5   : > { %1333 = dma.done.wait (%p1136_p8), %s1042_s10, 32  }
 0x3b6   : > { %1335 = vsyncadd (%p1136_p8), %s1042_s10, 4294967264  ;;  %p22_p10 = scmp.ge.s32.totalorder %s1430_s8, 4   ;;  %s1747_s26 = smov %s1342_s27 }
 0x3b7   : > { %s1748_s27 = smov %s1346_s28  ;;  %s1749_s28 = smov %s1442_s11 }
 0x3b8   : > { %s1750_s29 = smov %s1430_s8  ;;  %24 = sbr.rel (!%p22_p10) target bundleno = 8 (0x8), region = 105 }
 0x3bd   :  { %1048 = vsyncpa [#allocation7], 1 }
 0x3be   :  { %1050 = vsyncpa [#allocation7 + $0x1], 1 }
 0x3bf   :  { %1051 = vsyncpa [#allocation8], 1 }
 0x3c0   :  { %1053 = vsyncpa [#allocation8 + $0x1], 1 }

</bundles_post_ra>
